<compile_context>
chip_gen: v7x
topology: tpu7x:2x2x1
jax: 0.10.0
libtpu: 0.0.40
codegen_flags: <defaults>
</compile_context>

<pallas_src>
import jax
import jax.numpy as jnp
from jax import lax
from jax.experimental import pallas as pl
from jax.experimental.pallas import tpu as pltpu

EPS = 1e-4                 # matches l2normalize(v, eps=0.0001)
POWER_ITERATIONS = 1
_MAX_WHOLE_W_BYTES = 48 << 20   # pass-1 whole-W residency cap (v7x: 64 MiB VMEM)


def _round_up(n, m):
    return ((n + m - 1) // m) * m


# ---------------------------------------------------------------------------
# Pass 1: power iteration over the full (padded) W -> 1/sigma and updated u.
# W stays in its native (bf16) dtype; only the tiny u/v row vectors are cast
# down for the MXU matvecs, all reductions/normalization run in f32.
# ---------------------------------------------------------------------------
def _sigma_kernel(w_ref, u_ref, inv_sigma_ref, u_new_ref):
    w = w_ref[...]                                 # (Hp, Kp), native dtype (bf16)
    u32 = u_ref[...]                               # (1, Hp) f32

    wv32 = None
    for _ in range(POWER_ITERATIONS):
        # v = l2normalize(W^T u): (1, Hp) @ (Hp, Kp) -> (1, Kp), no transpose.
        wt_u = jnp.dot(u32.astype(w.dtype), w, preferred_element_type=jnp.float32)
        v32 = wt_u / (jnp.sqrt(jnp.sum(wt_u * wt_u)) + EPS)
        # u = l2normalize(W v): contract the Kp axes directly (no w.T copy).
        wv32 = lax.dot_general(v32.astype(w.dtype), w,
                               dimension_numbers=(((1,), (1,)), ((), ())),
                               preferred_element_type=jnp.float32)   # (1, Hp)
        u32 = wv32 / (jnp.sqrt(jnp.sum(wv32 * wv32)) + EPS)

    sigma = jnp.sum(u32 * wv32)
    # No guard on sigma==0: an all-zero/pathological W yields inf/NaN, which is
    # exactly what the PyTorch reference does (parity-consistent).
    inv_sigma_ref[0, 0] = 1.0 / sigma              # scalar -> SMEM output
    u_new_ref[...] = u32.astype(u_new_ref.dtype)


def _power_iteration(w_p, u_p):
    Hp, Kp = w_p.shape
    w_bytes = Hp * Kp * jnp.dtype(w_p.dtype).itemsize
    # Explicit scoped-VMEM limit: covers whole-W residency even on v5e's 16 MiB
    # default, while staying under v7x's 64 MiB physical VMEM.
    vmem_limit = int(min(max(w_bytes + (4 << 20), 16 << 20), _MAX_WHOLE_W_BYTES))
    return pl.pallas_call(
        _sigma_kernel,
        out_shape=(jax.ShapeDtypeStruct((1, 1), jnp.float32),    # inv_sigma
                   jax.ShapeDtypeStruct((1, Hp), jnp.float32)),  # updated u
        in_specs=[
            pl.BlockSpec(memory_space=pltpu.MemorySpace.VMEM),   # W_bar (Hp, Kp)
            pl.BlockSpec(memory_space=pltpu.MemorySpace.VMEM),   # u     (1, Hp)
        ],
        out_specs=(
            pl.BlockSpec(memory_space=pltpu.MemorySpace.SMEM),
            pl.BlockSpec(memory_space=pltpu.MemorySpace.VMEM),
        ),
        compiler_params=pltpu.CompilerParams(vmem_limit_bytes=vmem_limit),
        cost_estimate=pl.CostEstimate(
            flops=4 * Hp * Kp * POWER_ITERATIONS,
            transcendentals=3 * POWER_ITERATIONS,
            bytes_accessed=w_bytes + 4 * (2 * Hp + 1)),
    )(w_p, u_p)


# ---------------------------------------------------------------------------
# Pass 2: tiled linear forward  y = (x @ W^T) * inv_sigma + b.
# Grid = (B/tm, H/tn, K/tk); reduction axis last; f32 accumulator in VMEM;
# bf16 operand tiles, bf16 output; 1/sigma and bias folded into finalize.
# ---------------------------------------------------------------------------
def _linear_sn_kernel(inv_sigma_ref, x_ref, w_ref, b_ref, y_ref, acc_ref):
    k = pl.program_id(2)

    @pl.when(k == 0)
    def _():
        acc_ref[...] = jnp.zeros_like(acc_ref)

    # (tm, tk) . (tn, tk) contracted over the shared K axis -> (tm, tn) f32.
    acc_ref[...] += lax.dot_general(
        x_ref[...], w_ref[...],
        dimension_numbers=(((1,), (1,)), ((), ())),
        preferred_element_type=jnp.float32)

    @pl.when(k == pl.num_programs(2) - 1)
    def _():
        inv_sigma = inv_sigma_ref[0, 0]            # cheap SMEM scalar read
        y_ref[...] = (acc_ref[...] * inv_sigma + b_ref[...]).astype(y_ref.dtype)


def _sn_linear_forward(inv_sigma, x_p, w_p, b_p, tm, tn, tk, out_dtype, vmem_limit):
    Bp, Kp = x_p.shape
    Hp = w_p.shape[0]
    grid = (Bp // tm, Hp // tn, Kp // tk)
    in_bytes = jnp.dtype(x_p.dtype).itemsize
    out_bytes = jnp.dtype(out_dtype).itemsize
    return pl.pallas_call(
        _linear_sn_kernel,
        out_shape=jax.ShapeDtypeStruct((Bp, Hp), out_dtype),
        grid_spec=pltpu.PrefetchScalarGridSpec(
            num_scalar_prefetch=0,
            grid=grid,
            in_specs=[
                pl.BlockSpec((1, 1), lambda i, j, k: (0, 0),
                             memory_space=pltpu.MemorySpace.SMEM),  # inv_sigma
                pl.BlockSpec((tm, tk), lambda i, j, k: (i, k)),     # x tile (bf16)
                # NOTE: on v5e, if profiling shows exposed DMA on the W stream,
                # add pipeline_mode=pl.Buffered(3) here.
                pl.BlockSpec((tn, tk), lambda i, j, k: (j, k)),     # W tile (bf16)
                pl.BlockSpec((1, tn), lambda i, j, k: (0, j)),      # bias tile (f32)
            ],
            out_specs=pl.BlockSpec((tm, tn), lambda i, j, k: (i, j)),
            scratch_shapes=[pltpu.VMEM((tm, tn), jnp.float32)],
        ),
        compiler_params=pltpu.CompilerParams(
            dimension_semantics=("parallel", "parallel", "arbitrary"),
            vmem_limit_bytes=vmem_limit),
        cost_estimate=pl.CostEstimate(
            flops=2 * Bp * Hp * Kp,
            transcendentals=0,
            bytes_accessed=(in_bytes * (Bp * Kp + Hp * Kp)
                            + out_bytes * Bp * Hp + 4 * (Hp + 1))),
    )(inv_sigma, x_p, w_p, b_p)


def spectral_norm_linear(w_bar, u, x, bias, *,
                         compute_dtype=jnp.bfloat16, out_dtype=None):
    """y = x @ (W/sigma)^T + b with sigma from one power iteration.

    Returns (y, u_new): PyTorch's SpectralNorm mutates the stored u buffer each
    forward, so the updated estimate is returned explicitly here.

    x/W are streamed to the MXU in `compute_dtype` (bf16 by default) with f32
    accumulation; norms / eps / sigma / bias / u are kept in f32.
    """
    if out_dtype is None:
        out_dtype = compute_dtype
    B, K = x.shape
    H, K2 = w_bar.shape
    assert K == K2, "in_features mismatch"

    # Lane-dense padding sized so the large-tile branches are always taken:
    # K -> multiple of 512 (tk in {512,1024}), H -> multiple of 256 (tn in {256,512}).
    Kp = _round_up(max(K, 512), 512)
    Hp = _round_up(max(H, 256), 256)
    tk = 1024 if Kp % 1024 == 0 else 512
    tn = 512 if Hp % 512 == 0 else 256

    # Batch tiling: let tm grow past 128 for large B to cut W re-streaming
    # (W is read Bp/tm times from HBM).
    if B <= 256:
        Bp = _round_up(max(B, 8), 8)
        tm = Bp
    else:
        tm = 512 if B > 1024 else 256
        Bp = _round_up(B, tm)

    # v7x megacore: with a single batch block, keep >= 2 blocks on the H
    # parallel axis so both TensorCores have work.
    if Bp // tm == 1 and Hp // tn < 2:
        tn = max(Hp // 2, 128)

    # Double-buffered working set for pass 2; cap at 48 MiB (v7x: 64 MiB VMEM).
    in_b = jnp.dtype(compute_dtype).itemsize
    out_b = jnp.dtype(out_dtype).itemsize
    need = (2 * tm * tk * in_b + 2 * tn * tk * in_b
            + 2 * tm * tn * out_b + tm * tn * 4 + 2 * tn * 4)
    vmem_limit = int(min(max(2 * need, 32 << 20), 48 << 20))

    # Pass-1 keeps the whole (padded) W resident in VMEM.
    w_bytes = Hp * Kp * in_b
    assert w_bytes <= _MAX_WHOLE_W_BYTES, (
        "W too large for whole-array sigma pass")
    # TODO(synk): for W > 48 MiB, tile the power iteration over K
    # (two-sweep reduction / emit_pipeline) instead of whole-W residency.

    f32 = jnp.float32
    # Zero padding leaves sigma and the (sliced) u update exactly unchanged.
    w_p = jnp.pad(w_bar.astype(compute_dtype), ((0, Hp - H), (0, Kp - K)))
    x_p = jnp.pad(x.astype(compute_dtype), ((0, Bp - B), (0, Kp - K)))
    u_p = jnp.pad(u.astype(f32), ((0, 0), (0, Hp - H)))
    b_p = jnp.pad(bias.astype(f32), ((0, 0), (0, Hp - H)))

    inv_sigma, u_new_p = _power_iteration(w_p, u_p)
    y_p = _sn_linear_forward(inv_sigma, x_p, w_p, b_p, tm, tn, tk,
                             out_dtype, vmem_limit)

    # TODO(synk): for demo-sized layers the two launches + pads dominate; a
    # fused variant (sigma prologue inside the GEMM kernel with W resident and
    # inv_sigma in SMEM scratch) would remove the second full HBM read of W.
    return y_p[:B, :H], u_new_p[:, :H]


def _reference(w_bar, u, x, bias, compute_dtype):
    """Pure-JAX reference mirroring the PyTorch forward on the same
    (compute_dtype-rounded) inputs the kernel consumes, with f32 math."""
    f32 = jnp.float32
    w = w_bar.astype(compute_dtype).astype(f32)
    xr = x.astype(compute_dtype).astype(f32)
    u_r = u[0].astype(f32)
    wv = None
    for _ in range(POWER_ITERATIONS):
        wt_u = w.T @ u_r
        v = wt_u / (jnp.linalg.norm(wt_u) + EPS)
        wv = w @ v
        u_r = wv / (jnp.linalg.norm(wv) + EPS)
    sigma = jnp.dot(u_r, wv)
    w_sn = w / sigma
    return xr @ w_sn.T + bias[0].astype(f32), u_r


if __name__ == "__main__":
    key = jax.random.PRNGKey(0)
    k_w, k_u, k_x, k_b = jax.random.split(key, 4)

    batch = 8
    in_features = 32
    out_features = 16   # "height" in the PyTorch module

    # Deterministic synthetic params mirroring _make_params shapes.
    w_bar = jax.random.normal(k_w, (out_features, in_features), jnp.float32) * 0.1
    u0 = jax.random.normal(k_u, (out_features,), jnp.float32)
    u0 = u0 / (jnp.linalg.norm(u0) + EPS)                 # l2normalize at init
    u = u0.reshape(1, out_features)
    bias = (jax.random.normal(k_b, (out_features,), jnp.float32) * 0.01
            ).reshape(1, out_features)
    x = jax.random.normal(k_x, (batch, in_features), jnp.float32)

    y, u_new = spectral_norm_linear(w_bar, u, x, bias)
    y = jax.block_until_ready(y)
    u_new = jax.block_until_ready(u_new)

    y_ref, u_ref = _reference(w_bar, u, x, bias, jnp.bfloat16)
    assert y.shape == (batch, out_features)
    assert u_new.shape == (1, out_features)
    # bf16 operand/output rounding (~0.4% relative) sits well inside 2e-2.
    assert jnp.allclose(y.astype(jnp.float32), y_ref, atol=2e-2, rtol=2e-2), \
        "output mismatch vs reference"
    assert jnp.allclose(u_new[0], u_ref, atol=2e-2, rtol=2e-2), "u update mismatch"

    # TODO(synk): the unused `weight_v` buffer from the PyTorch module is not
    # carried (PyTorch itself never reads it back in this implementation).
    print("KERNEL_OK")
</pallas_src>

<mosaic_0001>
module attributes {stable_mosaic.version = 11 : i64} {
  func.func @_sigma_kernel(%arg0: memref<256x512xbf16, #tpu.memory_space<vmem>>, %arg1: memref<1x256xf32, #tpu.memory_space<vmem>>, %arg2: memref<1x1xf32, #tpu.memory_space<smem>>, %arg3: memref<1x256xf32, #tpu.memory_space<vmem>>) attributes {dimension_semantics = [], scalar_prefetch = 0 : i64, scratch_operands = 0 : i64, tpu.core_type = #tpu.core_type<tc>} {
    %c0 = arith.constant 0 : index
    %c0_0 = arith.constant 0 : index
    %0 = vector.load %arg0[%c0, %c0_0] : memref<256x512xbf16, #tpu.memory_space<vmem>>, vector<256x512xbf16>
    %c0_1 = arith.constant 0 : index
    %c0_2 = arith.constant 0 : index
    %1 = vector.load %arg1[%c0_1, %c0_2] : memref<1x256xf32, #tpu.memory_space<vmem>>, vector<1x256xf32>
    %2 = arith.truncf %1 : vector<1x256xf32> to vector<1x256xbf16>
    %cst = arith.constant dense<0.000000e+00> : vector<1x512xf32>
    %3 = tpu.matmul %2, %0, %cst {dimension_numbers = #tpu.dot_dimension_numbers<[1], [0], [0], [1], [0, 0, 1, 1], [], []>} : vector<1x256xbf16>, vector<256x512xbf16>, vector<1x512xf32> -> vector<1x512xf32>
    %4 = arith.mulf %3, %3 : vector<1x512xf32>
    %5 = vector.shape_cast %4 : vector<1x512xf32> to vector<1x1x512xf32>
    %cst_3 = arith.constant dense<0.000000e+00> : vector<1xf32>
    %6 = vector.multi_reduction <add>, %5, %cst_3 [1, 2] : vector<1x1x512xf32> to vector<1xf32>
    %7 = vector.shape_cast %6 : vector<1xf32> to vector<1x1x1xf32>
    %8 = vector.extract %7[0, 0, 0] : f32 from vector<1x1x1xf32>
    %9 = math.sqrt %8 : f32
    %cst_4 = arith.constant 9.99999974E-5 : f32
    %10 = arith.addf %9, %cst_4 : f32
    %11 = vector.broadcast %10 : f32 to vector<1x512xf32>
    %12 = arith.divf %3, %11 : vector<1x512xf32>
    %13 = arith.truncf %12 : vector<1x512xf32> to vector<1x512xbf16>
    %cst_5 = arith.constant dense<0.000000e+00> : vector<1x256xf32>
    %14 = tpu.matmul %13, %0, %cst_5 {dimension_numbers = #tpu.dot_dimension_numbers<[1], [1], [0], [0], [0, 0, 1, 0], [], []>} : vector<1x512xbf16>, vector<256x512xbf16>, vector<1x256xf32> -> vector<1x256xf32>
    %15 = arith.mulf %14, %14 : vector<1x256xf32>
    %16 = vector.shape_cast %15 : vector<1x256xf32> to vector<1x1x256xf32>
    %cst_6 = arith.constant dense<0.000000e+00> : vector<1xf32>
    %17 = vector.multi_reduction <add>, %16, %cst_6 [1, 2] : vector<1x1x256xf32> to vector<1xf32>
    %18 = vector.shape_cast %17 : vector<1xf32> to vector<1x1x1xf32>
    %19 = vector.extract %18[0, 0, 0] : f32 from vector<1x1x1xf32>
    %20 = math.sqrt %19 : f32
    %cst_7 = arith.constant 9.99999974E-5 : f32
    %21 = arith.addf %20, %cst_7 : f32
    %22 = vector.broadcast %21 : f32 to vector<1x256xf32>
    %23 = arith.divf %14, %22 : vector<1x256xf32>
    %24 = arith.mulf %23, %14 : vector<1x256xf32>
    %25 = vector.shape_cast %24 : vector<1x256xf32> to vector<1x1x256xf32>
    %cst_8 = arith.constant dense<0.000000e+00> : vector<1xf32>
    %26 = vector.multi_reduction <add>, %25, %cst_8 [1, 2] : vector<1x1x256xf32> to vector<1xf32>
    %27 = vector.shape_cast %26 : vector<1xf32> to vector<1x1x1xf32>
    %28 = vector.extract %27[0, 0, 0] : f32 from vector<1x1x1xf32>
    %cst_9 = arith.constant 1.000000e+00 : f32
    %29 = arith.divf %cst_9, %28 : f32
    %c0_10 = arith.constant 0 : index
    %c0_11 = arith.constant 0 : index
    %30 = memref.load %arg2[%c0_10, %c0_11] : memref<1x1xf32, #tpu.memory_space<smem>>
    memref.store %29, %arg2[%c0_10, %c0_11] : memref<1x1xf32, #tpu.memory_space<smem>>
    %c0_12 = arith.constant 0 : index
    %c0_13 = arith.constant 0 : index
    %31 = vector.load %arg3[%c0_12, %c0_13] : memref<1x256xf32, #tpu.memory_space<vmem>>, vector<1x256xf32>
    tpu.vector_store %arg3[%c0_12, %c0_13], %23 {strides = array<i32>} : memref<1x256xf32, #tpu.memory_space<vmem>>, vector<1x256xf32>,
    return
  }
}

</mosaic_0001>

<bundles_post_ra>
// kernel: tpu_custom_call.1
= control target key start
LH: loop header
LB: loop body
LE: loop exit
PB: predicated region body
PF: predicated region fallthrough
CT: control target
= control target key end

     0   :  { %9 = vsyncpa [#allocation3], 0  ;;  %s1316_s0 = inlined_call_operand.hbm [shape: bf16[256,512], index: 0, kind: input, shape index: {}]   ;;  %s1317_s1 = inlined_call_operand.vmem [shape: f32[1,256], index: 1, kind: input, shape index: {}]   ;;  %s1318_s2 = inlined_call_operand.hbm [shape: f32[1,1], index: 2, kind: output, shape index: {0}]   ;;  %s1319_s3 = inlined_call_operand.hbm [shape: f32[1,256], index: 3, kind: output, shape index: {1}]  }
   0x1   :  { %10 = vsyncpa [#allocation5], 0 }
   0x2   :  { %11 = vsyncpa [#allocation4], 0  ;;  %s980_s12 = smov [#allocation2]   ;;  %s920_s16 = scalar_lea.hbm %s1316_s0, 8192 }
   0x3   :  { %s17_s13 = sshll.u32 %s980_s12, 4  ;;  %p921_p0 = scmp.ne.s32.totalorder %s1316_s0, %s920_s16  ;;  %s18_s13 = int_to_ptr.vmem [resolvable:$true] %s17_s13 }
   0x4   :  { %p924_p1 = scmp.lt.u32.totalorder %s920_s16, %s1316_s0 }
   0x6   :  { %p926_p2 = pnand %p924_p1, %p921_p0 }
   0x8   :  { %929 = shalt.err (!%p926_p2)
}
   0x9   :  { %s930_s21 = scalar_lea.vmem %s18_s13, 8192  ;;  %p935_p4 = scmp.lt.s32.totalorder %s18_s13, %s18_s13 }
   0xa   :  { %p931_p3 = scmp.ne.s32.totalorder %s18_s13, %s930_s21  ;;  %p936_p5 = scmp.lt.s32.totalorder %s930_s21, %s930_s21 }
   0xc   :  { %p937_p6 = por %p936_p5, %p935_p4 }
   0xe   :  { %p938_p7 = pnand %p937_p6, %p931_p3 }
  0x10   :  { %941 = shalt.err (!%p938_p7)
}
  0x11   :  { %s981_s22 = smov 256   ;;  %s982_s23 = smov 16  }
  0x12   :  { %23 = dma.hbm_to_vmem [thread:$0]  %s1316_s0, 8192, %s18_s13, [#allocation3], %s981_s22, %s981_s22, %s982_s23  }
  0x13   :  { %974 = dma.done.wait [#allocation3], 8192  }
  0x14   :  { %975 = vsyncadd [#allocation3], 4294959104  ;;  %v1018_v0 = vld [vmem:[#allocation2 + $0x4] ss:$16 sps:$4 sm:$0xff]   ;;  %v1020_v1 = vld [vmem:[#allocation2 + $0xc] ss:$16 sps:$4 sm:$0xff]   ;;  %v1320_v36 = vlaneseq }
  0x15   :  { %427 = vmatprep.subr.bf16.mxu0 %v1018_v0  ;;  %v1023_v2 = vld [vmem:[#allocation2] ss:$16 sps:$4 sm:$0xff]   ;;  %v1025_v3 = vld [vmem:[#allocation2 + $0x8] ss:$16 sps:$4 sm:$0xff]   ;;  %468 = vmatprep.subr.bf16.mxu1 %v1020_v1  ;;  %v1028_v4 = vld [vmem:[#allocation2 + $0x24] ss:$16 sps:$4 sm:$0xff]  }
  0x16   :  { %428 = vmatpush1.bf16.msra.mxu0 %v1023_v2  ;;  %469 = vmatpush1.bf16.msra.mxu1 %v1025_v3  ;;  %v1032_v5 = vld [vmem:[#allocation2 + $0x2c] ss:$16 sps:$4 sm:$0xff]   ;;  %v1034_v6 = vld [vmem:[#allocation2 + $0x20] ss:$16 sps:$4 sm:$0xff]   ;;  %v1037_v7 = vld [vmem:[#allocation2 + $0x28] ss:$16 sps:$4 sm:$0xff]  }
  0x17   :  { %429 = vmatprep.subr.bf16.mxu0 %v1028_v4  ;;  %470 = vmatprep.subr.bf16.mxu1 %v1032_v5  ;;  %v1040_v8 = vld [vmem:[#allocation2 + $0x44] ss:$16 sps:$4 sm:$0xff]   ;;  %v1042_v9 = vld [vmem:[#allocation2 + $0x4c] ss:$16 sps:$4 sm:$0xff]   ;;  %v1044_v10 = vld [vmem:[#allocation2 + $0x40] ss:$16 sps:$4 sm:$0xff]  }
  0x18   :  { %v1046_v11 = vld [vmem:[#allocation2 + $0x48] ss:$16 sps:$4 sm:$0xff]   ;;  %v1050_v12 = vld [vmem:[#allocation2 + $0x64] ss:$16 sps:$4 sm:$0xff]   ;;  %v1054_v13 = vld [vmem:[#allocation2 + $0x6c] ss:$16 sps:$4 sm:$0xff]  }
  0x19   :  { %v1056_v14 = vld [vmem:[#allocation2 + $0x60] ss:$16 sps:$4 sm:$0xff]   ;;  %v1060_v15 = vld [vmem:[#allocation2 + $0x68] ss:$16 sps:$4 sm:$0xff]   ;;  %v1062_v16 = vld [vmem:[#allocation2 + $0x84] ss:$16 sps:$4 sm:$0xff]  }
  0x1a   :  { %430 = vmatpush1.bf16.msra.mxu0 %v1034_v6  ;;  %471 = vmatpush1.bf16.msra.mxu1 %v1037_v7  ;;  %v1066_v17 = vld [vmem:[#allocation2 + $0x8c] ss:$16 sps:$4 sm:$0xff]   ;;  %v1068_v18 = vld [vmem:[#allocation2 + $0x80] ss:$16 sps:$4 sm:$0xff]   ;;  %v1070_v19 = vld [vmem:[#allocation2 + $0x88] ss:$16 sps:$4 sm:$0xff]  }
  0x1b   :  { %431 = vmatprep.subr.bf16.mxu0 %v1040_v8  ;;  %472 = vmatprep.subr.bf16.mxu1 %v1042_v9  ;;  %v1074_v20 = vld [vmem:[#allocation2 + $0xa4] ss:$16 sps:$4 sm:$0xff]   ;;  %v1078_v21 = vld [vmem:[#allocation2 + $0xac] ss:$16 sps:$4 sm:$0xff]   ;;  %v1080_v22 = vld [vmem:[#allocation2 + $0xa0] ss:$16 sps:$4 sm:$0xff]  }
  0x1c   :  { %v1084_v23 = vld [vmem:[#allocation2 + $0xa8] ss:$16 sps:$4 sm:$0xff]   ;;  %v1086_v24 = vld [vmem:[#allocation2 + $0xc4] ss:$16 sps:$4 sm:$0xff]   ;;  %v1090_v25 = vld [vmem:[#allocation2 + $0xcc] ss:$16 sps:$4 sm:$0xff]  }
  0x1d   :  { %v1092_v26 = vld [vmem:[#allocation2 + $0xc0] ss:$16 sps:$4 sm:$0xff]   ;;  %v1094_v27 = vld [vmem:[#allocation2 + $0xc8] ss:$16 sps:$4 sm:$0xff]   ;;  %v1098_v28 = vld [vmem:[#allocation2 + $0xe4] ss:$16 sps:$4 sm:$0xff]  }
  0x1e   :  { %432 = vmatpush1.bf16.msra.mxu0 %v1044_v10  ;;  %473 = vmatpush1.bf16.msra.mxu1 %v1046_v11  ;;  %v1102_v29 = vld [vmem:[#allocation2 + $0xec] ss:$16 sps:$4 sm:$0xff]   ;;  %v1104_v30 = vld [vmem:[#allocation2 + $0xe0] ss:$16 sps:$4 sm:$0xff]   ;;  %v1108_v31 = vld [vmem:[#allocation2 + $0xe8] ss:$16 sps:$4 sm:$0xff]  }
  0x1f   :  { %433 = vmatprep.subr.bf16.mxu0 %v1050_v12  ;;  %474 = vmatprep.subr.bf16.mxu1 %v1054_v13  ;;  %v1110_v32 = vld [vmem:[#allocation2 + $0x104] ss:$16 sps:$4 sm:$0xff]   ;;  %v1114_v33 = vld [vmem:[#allocation2 + $0x10c] ss:$16 sps:$4 sm:$0xff]   ;;  %v1116_v34 = vld [vmem:[#allocation2 + $0x100] ss:$16 sps:$4 sm:$0xff]  }
  0x20   :  { %v1118_v35 = vld [vmem:[#allocation2 + $0x108] ss:$16 sps:$4 sm:$0xff]   ;;  %v1122_v37 = vld [vmem:[#allocation2 + $0x124] ss:$16 sps:$4 sm:$0xff]   ;;  %v1126_v38 = vld [vmem:[#allocation2 + $0x12c] ss:$16 sps:$4 sm:$0xff]  }
  0x21   :  { %v1128_v39 = vld [vmem:[#allocation2 + $0x120] ss:$16 sps:$4 sm:$0xff]   ;;  %v1131_v40 = vshrl.u32 %v1320_v36, 7  ;;  %v1135_v41 = vld [vmem:[#allocation2 + $0x128] ss:$16 sps:$4 sm:$0xff]   ;;  %vm513_vm0 = vcmask 1040384  }
  0x22   :  { %434 = vmatpush1.bf16.msra.mxu0 %v1056_v14  ;;  %475 = vmatpush1.bf16.msra.mxu1 %v1060_v15  ;;  %v1137_v42 = vld [vmem:[#allocation2 + $0x144] ss:$16 sps:$4 sm:$0xff]   ;;  %v1141_v43 = vld [vmem:[#allocation2 + $0x14c] ss:$16 sps:$4 sm:$0xff]   ;;  %v1143_v44 = vld [vmem:[#allocation2 + $0x140] ss:$16 sps:$4 sm:$0xff]  }
  0x23   :  { %435 = vmatprep.subr.bf16.mxu0 %v1062_v16  ;;  %476 = vmatprep.subr.bf16.mxu1 %v1066_v17  ;;  %1326 = vst [vmem:[#allocation11_spill] sm:$0xff] %v1131_v40  ;;  %v1145_v45 = vld [vmem:[#allocation2 + $0x148] ss:$16 sps:$4 sm:$0xff]   ;;  %v101_v46 = vsub.s32 1, %v1131_v40  ;;  %v1150_v47 = vld [vmem:[#allocation2 + $0x164] ss:$16 sps:$4 sm:$0xff]  }
  0x24   :  { %v1154_v48 = vld [vmem:[#allocation2 + $0x16c] ss:$16 sps:$4 sm:$0xff]   ;;  %v93_v49 = vld [vmem:[%s1317_s1] sm:$0x3]  ;;  %v1163_v52 = vld [vmem:[#allocation2 + $0x168] ss:$16 sps:$4 sm:$0xff]  }
  0x25   :  { %v102_v50 = vrot.slane %v93_v49, %v101_v46  ;;  %v1161_v51 = vld [vmem:[#allocation2 + $0x160] ss:$16 sps:$4 sm:$0xff]   ;;  %v1167_v53 = vld [vmem:[#allocation2 + $0x184] ss:$16 sps:$4 sm:$0xff]   ;;  %v1169_v54 = vld [vmem:[#allocation2 + $0x18c] ss:$16 sps:$4 sm:$0xff]  }
  0x26   :  { %436 = vmatpush1.bf16.msra.mxu0 %v1068_v18  ;;  %477 = vmatpush1.bf16.msra.mxu1 %v1070_v19  ;;  %v1173_v56 = vld [vmem:[#allocation2 + $0x180] ss:$16 sps:$4 sm:$0xff]   ;;  %v1175_v57 = vld [vmem:[#allocation2 + $0x188] ss:$16 sps:$4 sm:$0xff]   ;;  %v1179_v58 = vld [vmem:[#allocation2 + $0x1a4] ss:$16 sps:$4 sm:$0xff]  }
  0x27   :  { %437 = vmatprep.subr.bf16.mxu0 %v1074_v20  ;;  %478 = vmatprep.subr.bf16.mxu1 %v1078_v21  ;;  %v106_v55 = vpack.c.bf16 %v102_v50, %v102_v50  ;;  %1327 = vst [vmem:[#allocation12_spill] sm:$0xff] %v1179_v58  ;;  %v1181_v59 = vld [vmem:[#allocation2 + $0x1ac] ss:$16 sps:$4 sm:$0xff]   ;;  %v1185_v60 = vld [vmem:[#allocation2 + $0x1a0] ss:$16 sps:$4 sm:$0xff]   ;;  %v97_v46 = vsub.s32 0, %v1131_v40 }
  0x28   :  { %1328 = vst [vmem:[#allocation13_spill] sm:$0xff] %v1181_v59  ;;  %v1187_v61 = vld [vmem:[#allocation2 + $0x1a8] ss:$16 sps:$4 sm:$0xff]   ;;  %v1191_v62 = vld [vmem:[#allocation2 + $0x1c4] ss:$16 sps:$4 sm:$0xff]   ;;  %s984_s5 = smov [#allocation7]  }
  0x29   :  { %459 = vmatprep.mubr.bf16.mxu0 %v106_v55  ;;  %500 = vmatprep.mubr.bf16.mxu1 %v106_v55  ;;  %1329 = vst [vmem:[#allocation14_spill] sm:$0xff] %v1187_v61  ;;  %1330 = vst [vmem:[#allocation15_spill] sm:$0xff] %v1191_v62  ;;  %v1193_v63 = vld [vmem:[#allocation2 + $0x1cc] ss:$16 sps:$4 sm:$0xff]   ;;  %v1198_v50 = vld [vmem:[#allocation2 + $0x1c0] ss:$16 sps:$4 sm:$0xff]  }
  0x2a   :  { %438 = vmatpush1.bf16.msra.mxu0 %v1080_v22  ;;  %479 = vmatpush1.bf16.msra.mxu1 %v1084_v23  ;;  %v1200_v55 = vld [vmem:[#allocation2 + $0x1c8] ss:$16 sps:$4 sm:$0xff]   ;;  %v1204_v36 = vld [vmem:[#allocation2 + $0x1e4] ss:$16 sps:$4 sm:$0xff]   ;;  %v1210_v40 = vld [vmem:[#allocation2 + $0x1e0] ss:$16 sps:$4 sm:$0xff]  }
  0x2b   :  { %439 = vmatprep.subr.bf16.mxu0 %v1086_v24  ;;  %480 = vmatprep.subr.bf16.mxu1 %v1090_v25  ;;  %s716_s6 = sshll.u32 %s984_s5, 4  ;;  %s717_s6 = int_to_ptr.vmem [resolvable:$true] %s716_s6 }
  0x2c   :  { %s942_s7 = scalar_lea.vmem %s717_s6, 32  ;;  %p947_p9 = scmp.lt.s32.totalorder %s717_s6, %s717_s6 }
  0x2d   :  { %p943_p8 = scmp.ne.s32.totalorder %s717_s6, %s942_s7  ;;  %p948_p10 = scmp.lt.s32.totalorder %s942_s7, %s942_s7 }
  0x2e   :  { %440 = vmatpush1.bf16.msra.mxu0 %v1092_v26  ;;  %481 = vmatpush1.bf16.msra.mxu1 %v1094_v27 }
  0x2f   :  { %441 = vmatprep.subr.bf16.mxu0 %v1098_v28  ;;  %482 = vmatprep.subr.bf16.mxu1 %v1102_v29  ;;  %p949_p11 = por %p948_p10, %p947_p9 }
  0x31   :  { %p950_p12 = pnand %p949_p11, %p943_p8 }
  0x32   :  { %442 = vmatpush1.bf16.msra.mxu0 %v1104_v30  ;;  %483 = vmatpush1.bf16.msra.mxu1 %v1108_v31 }
  0x33   :  { %443 = vmatprep.subr.bf16.mxu0 %v1110_v32  ;;  %484 = vmatprep.subr.bf16.mxu1 %v1114_v33 }
  0x36   :  { %444 = vmatpush1.bf16.msra.mxu0 %v1116_v34  ;;  %485 = vmatpush1.bf16.msra.mxu1 %v1118_v35 }
  0x37   :  { %445 = vmatprep.subr.bf16.mxu0 %v1122_v37  ;;  %486 = vmatprep.subr.bf16.mxu1 %v1126_v38 }
  0x3a   :  { %446 = vmatpush1.bf16.msra.mxu0 %v1128_v39  ;;  %487 = vmatpush1.bf16.msra.mxu1 %v1135_v41 }
  0x3b   :  { %447 = vmatprep.subr.bf16.mxu0 %v1137_v42  ;;  %488 = vmatprep.subr.bf16.mxu1 %v1141_v43 }
  0x3e   :  { %448 = vmatpush1.bf16.msra.mxu0 %v1143_v44  ;;  %489 = vmatpush1.bf16.msra.mxu1 %v1145_v45 }
  0x3f   :  { %449 = vmatprep.subr.bf16.mxu0 %v1150_v47  ;;  %490 = vmatprep.subr.bf16.mxu1 %v1154_v48 }
  0x42   :  { %450 = vmatpush1.bf16.msra.mxu0 %v1161_v51  ;;  %491 = vmatpush1.bf16.msra.mxu1 %v1163_v52 }
  0x43   :  { %451 = vmatprep.subr.bf16.mxu0 %v1167_v53  ;;  %492 = vmatprep.subr.bf16.mxu1 %v1169_v54 }
  0x46   :  { %452 = vmatpush1.bf16.msra.mxu0 %v1173_v56  ;;  %493 = vmatpush1.bf16.msra.mxu1 %v1175_v57 }
  0x47   :  { %453 = vmatprep.subr.bf16.mxu0 %v1179_v58  ;;  %494 = vmatprep.subr.bf16.mxu1 %v1181_v59  ;;  %v1206_v59 = vld [vmem:[#allocation2 + $0x1ec] ss:$16 sps:$4 sm:$0xff]   ;;  %v98_v58 = vrot.slane %v93_v49, %v97_v46 }
  0x4a   :  { %454 = vmatpush1.bf16.msra.mxu0 %v1185_v60  ;;  %495 = vmatpush1.bf16.msra.mxu1 %v1187_v61  ;;  %v1212_v61 = vld [vmem:[#allocation2 + $0x1e8] ss:$16 sps:$4 sm:$0xff]  }
  0x4b   :  { %455 = vmatprep.subr.bf16.mxu0 %v1191_v62  ;;  %496 = vmatprep.subr.bf16.mxu1 %v1193_v63  ;;  %v105_v62 = vpack.c.bf16 %v98_v58, %v98_v58 }
  0x4e   :  { %456 = vmatpush1.bf16.msra.mxu0 %v1198_v50  ;;  %497 = vmatpush1.bf16.msra.mxu1 %v1200_v55 }
  0x4f   :  { %457 = vmatprep.subr.bf16.mxu0 %v1204_v36  ;;  %498 = vmatprep.subr.bf16.mxu1 %v1206_v59 }
  0x52   :  { %458 = vmatpush1.bf16.msra.mxu0 %v1210_v40  ;;  %499 = vmatpush1.bf16.msra.mxu1 %v1212_v61 }
  0x53   :  { %550 = vmatprep.subr.bf16.mxu1 %v1018_v0  ;;  %591 = vmatprep.subr.bf16.mxu0 %v1020_v1  ;;  %v1331_v0 = vld [vmem:[#allocation12_spill] sm:$0xff]  ;;  %v1332_v1 = vld [vmem:[#allocation13_spill] sm:$0xff] }
  0x55   :  { %460 = vmatmul.mubr.bf16.vlgmr.msra.gmra.mrb[0].mxu0 %v105_v62  ;;  %501 = vmatmul.mubr.bf16.vlgmr.msra.gmra.mrb[0].mxu1 %v105_v62 }
  0x5b   :  { %551 = vmatpush1.bf16.xpose.msra.mxu1 %v1023_v2  ;;  %592 = vmatpush1.bf16.xpose.msra.mxu0 %v1025_v3  ;;  %v1333_v2 = vld [vmem:[#allocation14_spill] sm:$0xff]  ;;  %v1334_v3 = vld [vmem:[#allocation15_spill] sm:$0xff] }
  0x5c   :  { %552 = vmatprep.subr.bf16.mxu1 %v1028_v4  ;;  %593 = vmatprep.subr.bf16.mxu0 %v1032_v5 }
  0x63   :  { %553 = vmatpush1.bf16.xpose.msra.mxu1 %v1034_v6  ;;  %594 = vmatpush1.bf16.xpose.msra.mxu0 %v1037_v7 }
  0x64   :  { %554 = vmatprep.subr.bf16.mxu1 %v1040_v8  ;;  %595 = vmatprep.subr.bf16.mxu0 %v1042_v9 }
  0x6b   :  { %555 = vmatpush1.bf16.xpose.msra.mxu1 %v1044_v10  ;;  %596 = vmatpush1.bf16.xpose.msra.mxu0 %v1046_v11 }
  0x6c   :  { %556 = vmatprep.subr.bf16.mxu1 %v1050_v12  ;;  %597 = vmatprep.subr.bf16.mxu0 %v1054_v13 }
  0x73   :  { %557 = vmatpush1.bf16.xpose.msra.mxu1 %v1056_v14  ;;  %598 = vmatpush1.bf16.xpose.msra.mxu0 %v1060_v15 }
  0x74   :  { %558 = vmatprep.subr.bf16.mxu1 %v1062_v16  ;;  %599 = vmatprep.subr.bf16.mxu0 %v1066_v17 }
  0x7b   :  { %559 = vmatpush1.bf16.xpose.msra.mxu1 %v1068_v18  ;;  %600 = vmatpush1.bf16.xpose.msra.mxu0 %v1070_v19 }
  0x7c   :  { %560 = vmatprep.subr.bf16.mxu1 %v1074_v20  ;;  %601 = vmatprep.subr.bf16.mxu0 %v1078_v21 }
  0x83   :  { %561 = vmatpush1.bf16.xpose.msra.mxu1 %v1080_v22  ;;  %602 = vmatpush1.bf16.xpose.msra.mxu0 %v1084_v23 }
  0x84   :  { %562 = vmatprep.subr.bf16.mxu1 %v1086_v24  ;;  %603 = vmatprep.subr.bf16.mxu0 %v1090_v25 }
  0x8b   :  { %563 = vmatpush1.bf16.xpose.msra.mxu1 %v1092_v26  ;;  %604 = vmatpush1.bf16.xpose.msra.mxu0 %v1094_v27 }
  0x8c   :  { %564 = vmatprep.subr.bf16.mxu1 %v1098_v28  ;;  %605 = vmatprep.subr.bf16.mxu0 %v1102_v29 }
  0x93   :  { %565 = vmatpush1.bf16.xpose.msra.mxu1 %v1104_v30  ;;  %606 = vmatpush1.bf16.xpose.msra.mxu0 %v1108_v31 }
  0x94   :  { %566 = vmatprep.subr.bf16.mxu1 %v1110_v32  ;;  %607 = vmatprep.subr.bf16.mxu0 %v1114_v33 }
  0x9b   :  { %567 = vmatpush1.bf16.xpose.msra.mxu1 %v1116_v34  ;;  %608 = vmatpush1.bf16.xpose.msra.mxu0 %v1118_v35 }
  0x9c   :  { %568 = vmatprep.subr.bf16.mxu1 %v1122_v37  ;;  %609 = vmatprep.subr.bf16.mxu0 %v1126_v38 }
  0xa3   :  { %569 = vmatpush1.bf16.xpose.msra.mxu1 %v1128_v39  ;;  %610 = vmatpush1.bf16.xpose.msra.mxu0 %v1135_v41 }
  0xa4   :  { %570 = vmatprep.subr.bf16.mxu1 %v1137_v42  ;;  %611 = vmatprep.subr.bf16.mxu0 %v1141_v43 }
  0xab   :  { %571 = vmatpush1.bf16.xpose.msra.mxu1 %v1143_v44  ;;  %612 = vmatpush1.bf16.xpose.msra.mxu0 %v1145_v45 }
  0xac   :  { %572 = vmatprep.subr.bf16.mxu1 %v1150_v47  ;;  %613 = vmatprep.subr.bf16.mxu0 %v1154_v48 }
  0xb3   :  { %573 = vmatpush1.bf16.xpose.msra.mxu1 %v1161_v51  ;;  %614 = vmatpush1.bf16.xpose.msra.mxu0 %v1163_v52 }
  0xb4   :  { %574 = vmatprep.subr.bf16.mxu1 %v1167_v53  ;;  %615 = vmatprep.subr.bf16.mxu0 %v1169_v54 }
  0xbb   :  { %575 = vmatpush1.bf16.xpose.msra.mxu1 %v1173_v56  ;;  %616 = vmatpush1.bf16.xpose.msra.mxu0 %v1175_v57 }
  0xbc   :  { %576 = vmatprep.subr.bf16.mxu1 %v1331_v0  ;;  %617 = vmatprep.subr.bf16.mxu0 %v1332_v1 }
  0xc3   :  { %577 = vmatpush1.bf16.xpose.msra.mxu1 %v1185_v60  ;;  %618 = vmatpush1.bf16.xpose.msra.mxu0 %v1333_v2 }
  0xc4   :  { %578 = vmatprep.subr.bf16.mxu1 %v1334_v3  ;;  %619 = vmatprep.subr.bf16.mxu0 %v1193_v63 }
  0xcb   :  { %579 = vmatpush1.bf16.xpose.msra.mxu1 %v1198_v50  ;;  %620 = vmatpush1.bf16.xpose.msra.mxu0 %v1200_v55 }
  0xcc   :  { %580 = vmatprep.subr.bf16.mxu1 %v1204_v36  ;;  %621 = vmatprep.subr.bf16.mxu0 %v1206_v59 }
  0xd3   :  { %581 = vmatpush1.bf16.xpose.msra.mxu1 %v1210_v40  ;;  %622 = vmatpush1.bf16.xpose.msra.mxu0 %v1212_v61 }
 0x128   :  { %v461_v4 = vpop.f32.mrb[0].mxu0  ;;  %v502_v5 = vpop.f32.mrb[0].mxu1 }
 0x129   :  { %v509_v6 = vmul.f32 %v461_v4, %v461_v4  ;;  %v511_v7 = vmul.f32 %v502_v5, %v502_v5  ;;  %v463_v8 = vpop.f32.mrb[1].mxu0  ;;  %v504_v9 = vpop.f32.mrb[1].mxu1 }
 0x12a   :  { %v510_v10 = vmul.f32 %v463_v8, %v463_v8  ;;  %v465_v11 = vpop.f32.mrb[2].mxu0  ;;  %v506_v12 = vpop.f32.mrb[2].mxu1  ;;  %v512_v17 = vmul.f32 %v504_v9, %v504_v9 }
 0x12b   :  { %v514_v13 = vsel %vm513_vm0, %v509_v6, 0.0  ;;  %v466_v14 = vpop.f32.mrb[3].mxu0  ;;  %v507_v15 = vpop.f32.mrb[3].mxu1  ;;  %v517_v18 = vsel %vm513_vm0, %v511_v7, 0.0  ;;  %v983_v11 = vmov 1966171168  }
 0x12c   :  { %v515_v16 = vsel %vm513_vm0, %v510_v10, 0.0  ;;  %v519_v21 = vsel %vm513_vm0, %v512_v17, 0.0  ;;  %v683_v12 = vunpack.c.l.s4 %v983_v11  ;;  %v1335_v17 = vld [vmem:[#allocation11_spill] sm:$0xff] }
 0x12d   :  { %v516_v19 = vadd.f32 %v515_v16, %v514_v13 }
 0x12e   :  { %v684_v13 = vunpack.c.0.s8 %v683_v12 }
 0x12f   :  { %v518_v20 = vadd.f32 %v517_v18, %v516_v19 }
 0x130   :  { %v687_v18 = vsub.s32 %v684_v13, %v1335_v17 }
 0x131   :  { %v520_v22 = vadd.f32 %v519_v21, %v518_v20 }
 0x133   :  { %521 = vadd.xlane.f32.xlu0 %v520_v22 }
 0x1c0   :  { %v522_v23 = vpop.xlane.xlu0 %521 }
 0x1c1   :  { %v523_v24 = vrot.slane %v522_v23, 4 }
 0x1c3   :  { %v524_v25 = vadd.f32 %v523_v24, %v522_v23 }
 0x1c5   :  { %v525_v26 = vrot.slane %v524_v25, 2 }
 0x1c7   :  { %v526_v27 = vadd.f32 %v525_v26, %v524_v25  ;;  %v1336_v26 = vlaneseq }
 0x1c9   :  { %v527_v28 = vrot.slane %v526_v27, 1  ;;  %vm699_vm5 = vcmp.lt.s32.totalorder %v1336_v26, 256 }
 0x1cb   :  { %v528_v29 = vadd.f32 %v527_v28, %v526_v27 }
 0x1cd   :  { %796 = vpush %v528_v29 }
 0x1fe   :  { %s797_s1 = spop %796 }
 0x1ff   :  { %v530_v30 = vstv %s797_s1 }
 0x200   :  { %910 = vrsqrt.f32 %v530_v30  ;;  %vm533_vm1 = vcmp.eq.f32.partialorder %v530_v30, inf  ;;  %v536_v33 = vand.u32 2147483648, %v530_v30  ;;  %vm535_vm2 = vcmp.eq.f32.partialorder %v530_v30, 0.0 }
 0x20a   :  { %v911_v31 = vpop.eup %910 }
 0x20b   :  { %v532_v32 = vmul.f32 %v911_v31, %v530_v30 }
 0x20d   :  { %v534_v34 = vsel %vm533_vm1, %v530_v30, %v532_v32 }
 0x20e   :  { %v537_v35 = vsel %vm535_vm2, %v536_v33, %v534_v34 }
 0x20f   :  { %798 = vpush %v537_v35 }
 0x240   :  { %s799_s27 = spop %798 }
 0x241   :  { %s539_s28 = sadd.f32 0.0001, %s799_s27 }
 0x243   :  { %v540_v36 = vstv %s539_s28 }
 0x244   :  { %912 = vrcp.f32 %v540_v36 }
 0x24e   :  { %v913_v37 = vpop.eup %912 }
 0x24f   :  { %v543_v38 = vmul.f32 %v913_v37, %v463_v8  ;;  %v545_v39 = vmul.f32 %v913_v37, %v504_v9  ;;  %v542_v40 = vmul.f32 %v913_v37, %v461_v4  ;;  %v544_v41 = vmul.f32 %v913_v37, %v502_v5 }
 0x251   :  { %v547_v42 = vpack.c.bf16 %v543_v38, %v543_v38  ;;  %v549_v43 = vpack.c.bf16 %v545_v39, %v545_v39  ;;  %v546_v44 = vpack.c.bf16 %v542_v40, %v542_v40  ;;  %v548_v45 = vpack.c.bf16 %v544_v41, %v544_v41 }
 0x253   :  { %582 = vmatprep.mubr.bf16.mxu1 %v547_v42  ;;  %623 = vmatprep.mubr.bf16.mxu0 %v549_v43 }
 0x254   :  { %583 = vmatmul.mubr.bf16.vlgmr.msra.gmra.mrb[4].mxu1 %v546_v44  ;;  %624 = vmatmul.mubr.bf16.vlgmr.msra.gmra.mrb[4].mxu0 %v548_v45 }
 0x327   :  { %v584_v47 = vpop.f32.mrb[4].mxu1  ;;  %v625_v48 = vpop.f32.mrb[4].mxu0 }
 0x328   :  { %v626_v49 = vadd.f32 %v625_v48, %v584_v47  ;;  %v586_v51 = vpop.f32.mrb[5].mxu1  ;;  %v627_v52 = vpop.f32.mrb[5].mxu0 }
 0x329   :  { %v628_v53 = vadd.f32 %v627_v52, %v586_v51  ;;  %v588_v54 = vpop.f32.mrb[6].mxu1  ;;  %v629_v56 = vpop.f32.mrb[6].mxu0 }
 0x32a   :  { %v589_v57 = vpop.f32.mrb[7].mxu1  ;;  %v630_v58 = vpop.f32.mrb[7].mxu0  ;;  %v632_v59 = vmul.f32 %v626_v49, %v626_v49 }
 0x32b   :  { %v633_v60 = vmul.f32 %v628_v53, %v628_v53 }
 0x32c   :  { %v634_v61 = vsel %vm513_vm0, %v632_v59, 0.0 }
 0x32d   :  { %v635_v62 = vsel %vm513_vm0, %v633_v60, 0.0 }
 0x32e   :  { %v636_v63 = vadd.f32 %v635_v62, %v634_v61 }
 0x330   :  { %637 = vadd.xlane.f32.xlu0 %v636_v63 }
 0x3bd   :  { %v638_v46 = vpop.xlane.xlu0 %637 }
 0x3be   :  { %v639_v50 = vrot.slane %v638_v46, 4 }
 0x3c0   :  { %v640_v55 = vadd.f32 %v639_v50, %v638_v46 }
 0x3c2   :  { %v641_v0 = vrot.slane %v640_v55, 2 }
 0x3c4   :  { %v642_v1 = vadd.f32 %v641_v0, %v640_v55 }
 0x3c6   :  { %v643_v2 = vrot.slane %v642_v1, 1 }
 0x3c8   :  { %v644_v3 = vadd.f32 %v643_v2, %v642_v1 }
 0x3ca   :  { %800 = vpush %v644_v3 }
 0x3fb   :  { %s801_s29 = spop %800 }
 0x3fc   :  { %v646_v4 = vstv %s801_s29 }
 0x3fd   :  { %914 = vrsqrt.f32 %v646_v4  ;;  %vm649_vm3 = vcmp.eq.f32.partialorder %v646_v4, inf  ;;  %v652_v7 = vand.u32 2147483648, %v646_v4  ;;  %vm651_vm4 = vcmp.eq.f32.partialorder %v646_v4, 0.0 }
 0x407   :  { %v915_v5 = vpop.eup %914 }
 0x408   :  { %v648_v6 = vmul.f32 %v915_v5, %v646_v4 }
 0x40a   :  { %v650_v8 = vsel %vm649_vm3, %v646_v4, %v648_v6 }
 0x40b   :  { %v653_v9 = vsel %vm651_vm4, %v652_v7, %v650_v8 }
 0x40c   :  { %802 = vpush %v653_v9 }
 0x43d   :  { %s803_s30 = spop %802 }
 0x43e   :  { %s655_s4 = sadd.f32 0.0001, %s803_s30 }
 0x440   :  { %v656_v10 = vstv %s655_s4 }
 0x441   :  { %916 = vrcp.f32 %v656_v10 }
 0x44b   :  { %v917_v14 = vpop.eup %916 }
 0x44c   :  { %v658_v15 = vmul.f32 %v917_v14, %v626_v49  ;;  %v659_v16 = vmul.f32 %v917_v14, %v628_v53 }
 0x44e   :  { %v660_v19 = vmul.f32 %v658_v15, %v626_v49  ;;  %v661_v20 = vmul.f32 %v659_v16, %v628_v53  ;;  %v681_v21 = vcombine.low %v658_v15, %v659_v16 }
 0x450   :  { %v662_v22 = vsel %vm513_vm0, %v660_v19, 0.0  ;;  %v663_v23 = vsel %vm513_vm0, %v661_v20, 0.0  ;;  %v688_v24 = vrot.slane %v681_v21, %v687_v18 }
 0x451   :  { %v664_v25 = vadd.f32 %v663_v23, %v662_v22 }
 0x452   :  { %v695_v27 = vrot.slane %v688_v24, %v687_v18 }
 0x453   :  { %665 = vadd.xlane.f32.xlu1 %v664_v25 }
 0x454   :  { %701 = vst.msk [vmem:[#allocation7] sm:$0x3] %vm699_vm5, %v695_v27 }
 0x455   :  { %953 = shalt.err (!%p950_p12)
}
 0x456   :  { %s954_s10 = scalar_lea.hbm %s1319_s3, 32 }
 0x457   :  { %p955_p13 = scmp.ne.s32.totalorder %s1319_s3, %s954_s10  ;;  %p958_p0 = scmp.lt.u32.totalorder %s954_s10, %s1319_s3 }
 0x459   :  { %p960_p1 = pnand %p958_p0, %p955_p13 }
 0x45b   :  { %963 = shalt.err (!%p960_p1)
}
 0x45c   :  { %719 = dma.vmem_to_hbm [thread:$0]  %s717_s6, 32, %s1319_s3, [#allocation4]  }
 0x45d   :  { %s964_s21 = scalar_lea.hbm %s1318_s2, 16 }
 0x45e   :  { %p965_p2 = scmp.ne.s32.totalorder %s1318_s2, %s964_s21  ;;  %p968_p3 = scmp.lt.u32.totalorder %s964_s21, %s1318_s2 }
 0x460   :  { %p970_p4 = pnand %p968_p3, %p965_p2 }
 0x4e0   :  { %v666_v28 = vpop.xlane.xlu1 %665 }
 0x4e1   :  { %v667_v29 = vrot.slane %v666_v28, 4 }
 0x4e3   :  { %v668_v30 = vadd.f32 %v667_v29, %v666_v28 }
 0x4e5   :  { %v669_v31 = vrot.slane %v668_v30, 2 }
 0x4e7   :  { %v670_v32 = vadd.f32 %v669_v31, %v668_v30 }
 0x4e9   :  { %v671_v33 = vrot.slane %v670_v32, 1 }
 0x4eb   :  { %v672_v34 = vadd.f32 %v671_v33, %v670_v32 }
 0x4ed   :  { %804 = vpush %v672_v34 }
 0x51e   :  { %s805_s17 = spop %804 }
 0x51f   :  { %v674_v35 = vstv %s805_s17 }
 0x520   :  { %918 = vrcp.f32 %v674_v35 }
 0x52a   :  { %v919_v36 = vpop.eup %918 }
 0x52b   :  { %806 = vpush %v919_v36 }
 0x55c   :  { %s807_s18 = spop %806 }
 0x55d   :  { %678 = sst [smem:[#allocation6]] %s807_s18 }
 0x55e   :  { %973 = shalt.err (!%p970_p4)
}
 0x55f   :  { %s985_s25 = smov [#allocation6]  }
 0x560   :  { %709 = dma.smem_to_hbm %s985_s25, 16, %s1318_s2, [#allocation5]  }
 0x561   :  { %976 = dma.done.wait [#allocation5], 16  }
 0x562   :  { %977 = vsyncadd [#allocation5], 4294967280 }
 0x563   :  { %978 = dma.done.wait [#allocation4], 32  }
 0x564   :  { %979 = vsyncadd [#allocation4], 4294967264 }
 0x565   :  { %726 = sfence }
 0x566   :  { %727 = vsyncpa [#allocation3], 1 }
 0x567   :  { %728 = vsyncpa [#allocation4], 1 }
 0x568   :  { %729 = vsyncpa [#allocation5], 1 }

</bundles_post_ra>
